<compile_context>
chip_gen: v7x
topology: tpu7x:2x2x1
jax: 0.10.0
libtpu: 0.0.40
codegen_flags: <defaults>
</compile_context>

<pallas_src>
import functools

import jax
import jax.numpy as jnp
import numpy as np
from jax.experimental import pallas as pl
from jax.experimental.pallas import tpu as pltpu


# ---------------------------------------------------------------------------
# Kernel
# ---------------------------------------------------------------------------
def pang_unit_kernel(x_ref, wf_ref, bias_ref, o_ref, *, img_h):
    """One row-tile grid step.

    x_ref    : (TM, W*Cin)            lane-packed rows; TM = whole images * H
    wf_ref   : (3, W*Cin, 2*W*Cout)   banded fused weight per 3x3 row tap
                                      (columns [0, W*Cout) = 3x3 branch,
                                       columns [W*Cout, 2*W*Cout) = 1x1 branch,
                                       1x1 block only in the center tap wf[1])
    bias_ref : (1, 2*W*Cout)          folded biases (f32)
    o_ref    : (TM, W*Cout)           lane-dense output tile
    """
    tm = x_ref.shape[0]
    w_cout = o_ref.shape[-1]

    xb = x_ref[...]                                     # compute dtype (f32 or bf16)

    # Three accumulating MXU pushes (dy = 0 / 1 / 2 taps), f32 accumulation.
    z_up = jnp.dot(xb, wf_ref[0], preferred_element_type=jnp.float32)
    z_md = jnp.dot(xb, wf_ref[1], preferred_element_type=jnp.float32)
    z_dn = jnp.dot(xb, wf_ref[2], preferred_element_type=jnp.float32)

    # Row shift of the off-center taps, applied to the f32 results with XLU sublane
    # rotates.  Tiles contain whole images, so (tile row % H) is the row index within
    # an image; masking those border rows implements the zero padding along H and also
    # kills the rotate wrap-around / inter-image crosstalk.
    row = jax.lax.broadcasted_iota(jnp.int32, (tm, 1), 0)
    h_img = row % img_h
    m_up = (h_img != 0).astype(jnp.float32)             # output row has a row above
    m_dn = (h_img != img_h - 1).astype(jnp.float32)     # output row has a row below

    y = (z_md
         + pltpu.roll(z_up, 1, 0) * m_up
         + pltpu.roll(z_dn, tm - 1, 0) * m_dn
         + bias_ref[...])

    y0 = jnp.maximum(y[:, :w_cout], 0.0)                # TLConv(3x3) branch: +bias, ReLU
    y1 = jnp.maximum(y[:, w_cout:], 0.0)                # BasicConv(1x1) branch: +bias, ReLU
    o_ref[...] = (y0 + y1).astype(o_ref.dtype)


def pang_unit_pallas(x_flat, wf, bias, *, img_h, tile_rows, out_dtype=jnp.float32):
    """x_flat: (N*H, W*Cin); wf: (3, W*Cin, 2*W*Cout); bias: (1, 2*W*Cout)."""
    m, w_cin = x_flat.shape
    w_cout = wf.shape[-1] // 2
    n_tiles = m // tile_rows
    kernel = functools.partial(pang_unit_kernel, img_h=img_h)
    return pl.pallas_call(
        kernel,
        out_shape=jax.ShapeDtypeStruct((m, w_cout), out_dtype),
        grid_spec=pltpu.PrefetchScalarGridSpec(
            num_scalar_prefetch=0,
            grid=(n_tiles,),
            in_specs=[
                pl.BlockSpec((tile_rows, w_cin), lambda t: (t, 0)),
                # Weights / bias: constant index_map -> stay VMEM-resident across steps.
                pl.BlockSpec(wf.shape, lambda t: (0, 0, 0)),
                pl.BlockSpec(bias.shape, lambda t: (0, 0)),
            ],
            out_specs=pl.BlockSpec((tile_rows, w_cout), lambda t: (t, 0)),
        ),
        compiler_params=pltpu.CompilerParams(
            dimension_semantics=("parallel",),          # rows split across TCs (v7x)
            vmem_limit_bytes=32 * 1024 * 1024,          # safe on v5e/v6e/v7x
        ),
    )(x_flat, wf, bias)


# ---------------------------------------------------------------------------
# Parameter preparation (host-side, one-time model-load cost)
# ---------------------------------------------------------------------------
def fold_bn(w_oihw, b_o, gamma, beta, mean, var, eps=1e-5):
    """Fold eval-mode BatchNorm into conv weight/bias (torch OIHW layout)."""
    scale = gamma / jnp.sqrt(var + eps)
    w_f = w_oihw * scale[:, None, None, None]
    b_f = (b_o - mean) * scale + beta
    return w_f, b_f


def pack_fused_weight(w3_oihw, b3, w1_oi, b1, width, compute_dtype=jnp.float32):
    """Banded fused weight (3, W*Cin, 2*W*Cout) and bias (1, 2*W*Cout).

    wf[dy] maps input row (h + dy - 1) to output row h.  Column block j of the first
    W*Cout columns is the 3x3 (TLConv) branch at width j; the second W*Cout columns are
    the 1x1 (BasicConv) branch (center tap only).  Zero padding along W is encoded by
    the missing (zero) bands, so no spatial padding is needed at runtime.
    """
    cout, cin = w1_oi.shape
    w3 = np.asarray(w3_oihw, np.float32)                 # (Cout, Cin, 3, 3)
    w1 = np.asarray(w1_oi, np.float32)                   # (Cout, Cin)
    wcin, wcout = width * cin, width * cout
    wf = np.zeros((3, wcin, 2 * wcout), np.float32)

    for dy in range(3):
        for dx in range(3):
            blk = w3[:, :, dy, dx].T                     # (Cin, Cout)
            for j in range(width):
                w_in = j + dx - 1
                if 0 <= w_in < width:
                    wf[dy, w_in * cin:(w_in + 1) * cin, j * cout:(j + 1) * cout] = blk

    blk1 = w1.T                                          # (Cin, Cout) — 1x1, center tap
    for j in range(width):
        wf[1, j * cin:(j + 1) * cin, wcout + j * cout: wcout + (j + 1) * cout] = blk1

    bias = np.concatenate([np.tile(np.asarray(b3, np.float32), width),
                           np.tile(np.asarray(b1, np.float32), width)])[None, :]
    return jnp.asarray(wf, compute_dtype), jnp.asarray(bias, jnp.float32)


# ---------------------------------------------------------------------------
# Tile-size selection
# ---------------------------------------------------------------------------
def _vmem_budget_bytes():
    """Conservative per-kernel VMEM budget (fits v7x's 64 MiB / 32 MiB scoped default)."""
    try:
        cap = pltpu.get_tpu_info().vmem_capacity_bytes
    except Exception:
        cap = 64 << 20
    return min(cap // 4, 16 << 20)


def _pick_images_per_tile(n, h, w_cin, w_cout, compute_dtype, out_dtype, wf_bytes):
    """Largest whole-image row tile that fits the VMEM budget, preferring >= 2 grid
    steps so both v7x TensorCores get work even at batch 1-per-core granularity."""
    in_bpe = np.dtype(compute_dtype).itemsize
    out_bpe = np.dtype(out_dtype).itemsize
    sub = 16 if (in_bpe < 4 or out_bpe < 4) else 8
    budget = _vmem_budget_bytes()
    fixed = 2 * (wf_bytes + 2 * w_cout * 4)              # resident weight + bias (buffered)

    def fits(k):
        tm = k * h
        per_step = (2 * tm * w_cin * in_bpe              # input block (double-buffered)
                    + 2 * tm * w_cout * out_bpe          # output block (double-buffered)
                    + 3 * tm * 2 * w_cout * 4            # f32 matmul results
                    + 2 * tm * 2 * w_cout * 4)           # rolled / epilogue temporaries
        return fixed + per_step <= budget

    divisors = [k for k in range(1, n + 1) if n % k == 0]
    aligned = [k for k in divisors if (k * h) % sub == 0 or k == n]
    if not aligned:
        aligned = [n]
    cands = [k for k in aligned if fits(k)]
    if not cands:
        return aligned[0]
    multi = [k for k in cands if n // k >= 2]
    return max(multi) if multi else max(cands)


# ---------------------------------------------------------------------------
# Public forward (matches the PyTorch NCHW interface)
# ---------------------------------------------------------------------------
def pang_unit_forward(x_nchw, params, *, images_per_tile=None,
                      compute_dtype=jnp.float32, out_dtype=jnp.float32):
    """Full Pang_unit forward.  x_nchw: (N, Cin, H, W) -> (N, Cout, H, W)."""
    n, cin, h, w = x_nchw.shape
    cout = params["w3"].shape[0]

    w3_f, b3_f = fold_bn(params["w3"], params["b3"], params["g3"],
                         params["be3"], params["m3"], params["v3"])
    w1_f, b1_f = fold_bn(params["w1"], params["b1"], params["g1"],
                         params["be1"], params["m1"], params["v1"])
    wf, bias = pack_fused_weight(w3_f, b3_f, w1_f[:, :, 0, 0], b1_f, w,
                                 compute_dtype=compute_dtype)

    if images_per_tile is None:
        images_per_tile = _pick_images_per_tile(
            n, h, w * cin, w * cout, compute_dtype, out_dtype,
            wf_bytes=wf.size * wf.dtype.itemsize)
    if n % images_per_tile != 0:
        raise ValueError(f"images_per_tile={images_per_tile} must divide N={n}")
    tile_rows = images_per_tile * h
    sub = 16 if (np.dtype(compute_dtype).itemsize < 4
                 or np.dtype(out_dtype).itemsize < 4) else 8
    if tile_rows % sub != 0 and tile_rows != n * h:
        raise ValueError(f"tile_rows={tile_rows} must be a multiple of {sub} "
                         f"(or equal N*H={n * h})")

    # Boundary layout glue only: the PyTorch spec is NCHW.  In an NHWC-native model
    # these transposes disappear (the kernel consumes/produces lane-packed NHWC rows).
    x_flat = (jnp.transpose(x_nchw, (0, 2, 3, 1))
                 .reshape(n * h, w * cin)
                 .astype(compute_dtype))                 # bf16 cast (if any) done once here

    y_flat = pang_unit_pallas(x_flat, wf, bias, img_h=h, tile_rows=tile_rows,
                              out_dtype=out_dtype)
    return jnp.transpose(y_flat.reshape(n, h, w, cout), (0, 3, 1, 2))


# ---------------------------------------------------------------------------
# Pure-JAX (XLA conv) reference with identical math
# ---------------------------------------------------------------------------
def pang_unit_reference(x_nchw, params):
    w3_f, b3_f = fold_bn(params["w3"], params["b3"], params["g3"],
                         params["be3"], params["m3"], params["v3"])
    w1_f, b1_f = fold_bn(params["w1"], params["b1"], params["g1"],
                         params["be1"], params["m1"], params["v1"])
    x = jnp.transpose(x_nchw, (0, 2, 3, 1))              # NHWC
    w3 = jnp.transpose(w3_f, (2, 3, 1, 0))               # HWIO
    w1 = jnp.transpose(w1_f, (2, 3, 1, 0))
    dn = ("NHWC", "HWIO", "NHWC")
    y0 = jax.lax.conv_general_dilated(x, w3, (1, 1), "SAME",
                                      dimension_numbers=dn) + b3_f
    y0 = jnp.maximum(y0, 0.0)
    y1 = jax.lax.conv_general_dilated(x, w1, (1, 1), "SAME",
                                      dimension_numbers=dn) + b1_f
    y1 = jnp.maximum(y1, 0.0)
    return jnp.transpose(y0 + y1, (0, 3, 1, 2))


def make_params(key, cin, cout):
    ks = jax.random.split(key, 12)
    p = {}
    # branch0: 3x3 conv (TLConv, tile_size=1) + BN
    p["w3"] = 0.1 * jax.random.normal(ks[0], (cout, cin, 3, 3), jnp.float32)
    p["b3"] = 0.1 * jax.random.normal(ks[1], (cout,), jnp.float32)
    p["g3"] = 1.0 + 0.1 * jax.random.normal(ks[2], (cout,), jnp.float32)
    p["be3"] = 0.1 * jax.random.normal(ks[3], (cout,), jnp.float32)
    p["m3"] = 0.1 * jax.random.normal(ks[4], (cout,), jnp.float32)
    p["v3"] = 1.0 + 0.5 * jax.random.uniform(ks[5], (cout,), jnp.float32)
    # branch1: 1x1 conv (BasicConv) + BN
    p["w1"] = 0.1 * jax.random.normal(ks[6], (cout, cin, 1, 1), jnp.float32)
    p["b1"] = 0.1 * jax.random.normal(ks[7], (cout,), jnp.float32)
    p["g1"] = 1.0 + 0.1 * jax.random.normal(ks[8], (cout,), jnp.float32)
    p["be1"] = 0.1 * jax.random.normal(ks[9], (cout,), jnp.float32)
    p["m1"] = 0.1 * jax.random.normal(ks[10], (cout,), jnp.float32)
    p["v1"] = 1.0 + 0.5 * jax.random.uniform(ks[11], (cout,), jnp.float32)
    return p


if __name__ == "__main__":
    N, CIN, COUT, H, W = 2, 4, 8, 16, 16

    key = jax.random.PRNGKey(0)
    kx, kp = jax.random.split(key)
    x = jax.random.normal(kx, (N, CIN, H, W), jnp.float32)   # NCHW, like PyTorch
    params = make_params(kp, CIN, COUT)

    ref = jax.block_until_ready(pang_unit_reference(x, params))

    # Auto tile: 1 image / step -> grid of 2 (both v7x TensorCores busy), f32 path.
    out = jax.block_until_ready(pang_unit_forward(x, params))
    assert out.shape == (N, COUT, H, W)
    np.testing.assert_allclose(np.asarray(out), np.asarray(ref), rtol=2e-3, atol=2e-3)

    # Multi-image tile (single grid step): exercises the in-tile image-boundary masking.
    out_1tile = jax.block_until_ready(pang_unit_forward(x, params, images_per_tile=2))
    np.testing.assert_allclose(np.asarray(out_1tile), np.asarray(ref),
                               rtol=2e-3, atol=2e-3)

    # bf16 activations/weights stored in HBM (v6e/v7x); f32 accumulation/epilogue/output.
    out_bf16 = jax.block_until_ready(
        pang_unit_forward(x, params, compute_dtype=jnp.bfloat16))
    np.testing.assert_allclose(np.asarray(out_bf16), np.asarray(ref),
                               rtol=5e-2, atol=5e-2)

    # bf16 output as well (v7x HBM-traffic option).
    out_bf16_o = jax.block_until_ready(
        pang_unit_forward(x, params, compute_dtype=jnp.bfloat16,
                          out_dtype=jnp.bfloat16))
    np.testing.assert_allclose(np.asarray(out_bf16_o, dtype=np.float32),
                               np.asarray(ref), rtol=8e-2, atol=8e-2)

    print("KERNEL_OK")
</pallas_src>

<mosaic_0001>
module attributes {stable_mosaic.version = 11 : i64} {
  func.func @pang_unit_kernel(%arg0: i32, %arg1: memref<16x64xf32, #tpu.memory_space<vmem>>, %arg2: memref<3x64x256xf32, #tpu.memory_space<vmem>>, %arg3: memref<1x256xf32, #tpu.memory_space<vmem>>, %arg4: memref<16x128xf32, #tpu.memory_space<vmem>>) attributes {dimension_semantics = [#tpu.dimension_semantics<parallel>], iteration_bounds = array<i64: 2>, scalar_prefetch = 0 : i64, scratch_operands = 0 : i64, tpu.core_type = #tpu.core_type<tc>, window_params = [{transform_indices = @transform_0, window_bounds = array<i64: 16, 64>}, {pipeline_mode = #tpu.pipeline_mode<synchronous>, transform_indices = @transform_1, window_bounds = array<i64: 3, 64, 256>}, {pipeline_mode = #tpu.pipeline_mode<synchronous>, transform_indices = @transform_2, window_bounds = array<i64: 1, 256>}, {transform_indices = @transform_3, window_bounds = array<i64: 16, 128>}]} {
    %c0 = arith.constant 0 : index
    %c0_0 = arith.constant 0 : index
    %0 = vector.load %arg1[%c0, %c0_0] : memref<16x64xf32, #tpu.memory_space<vmem>>, vector<16x64xf32>
    %c0_1 = arith.constant 0 : index
    %c0_2 = arith.constant 0 : index
    %c0_3 = arith.constant 0 : index
    %1 = vector.load %arg2[%c0_1, %c0_2, %c0_3] : memref<3x64x256xf32, #tpu.memory_space<vmem>>, vector<1x64x256xf32>
    %2 = vector.shape_cast %1 : vector<1x64x256xf32> to vector<64x256xf32>
    %cst = arith.constant dense<0.000000e+00> : vector<16x256xf32>
    %3 = tpu.matmul %0, %2, %cst {dimension_numbers = #tpu.dot_dimension_numbers<[1], [0], [0], [1], [0, 0, 1, 1], [], []>} : vector<16x64xf32>, vector<64x256xf32>, vector<16x256xf32> -> vector<16x256xf32>
    %c1 = arith.constant 1 : index
    %c0_4 = arith.constant 0 : index
    %c0_5 = arith.constant 0 : index
    %4 = vector.load %arg2[%c1, %c0_4, %c0_5] : memref<3x64x256xf32, #tpu.memory_space<vmem>>, vector<1x64x256xf32>
    %5 = vector.shape_cast %4 : vector<1x64x256xf32> to vector<64x256xf32>
    %cst_6 = arith.constant dense<0.000000e+00> : vector<16x256xf32>
    %6 = tpu.matmul %0, %5, %cst_6 {dimension_numbers = #tpu.dot_dimension_numbers<[1], [0], [0], [1], [0, 0, 1, 1], [], []>} : vector<16x64xf32>, vector<64x256xf32>, vector<16x256xf32> -> vector<16x256xf32>
    %c2 = arith.constant 2 : index
    %c0_7 = arith.constant 0 : index
    %c0_8 = arith.constant 0 : index
    %7 = vector.load %arg2[%c2, %c0_7, %c0_8] : memref<3x64x256xf32, #tpu.memory_space<vmem>>, vector<1x64x256xf32>
    %8 = vector.shape_cast %7 : vector<1x64x256xf32> to vector<64x256xf32>
    %cst_9 = arith.constant dense<0.000000e+00> : vector<16x256xf32>
    %9 = tpu.matmul %0, %8, %cst_9 {dimension_numbers = #tpu.dot_dimension_numbers<[1], [0], [0], [1], [0, 0, 1, 1], [], []>} : vector<16x64xf32>, vector<64x256xf32>, vector<16x256xf32> -> vector<16x256xf32>
    %10 = tpu.iota {dimensions = array<i32: 0>} : vector<16x1xi32>
    %c16_i32 = arith.constant 16 : i32
    %c0_i32 = arith.constant 0 : i32
    %11 = arith.cmpi eq, %c16_i32, %c0_i32 : i32
    %c1_i32 = arith.constant 1 : i32
    %12 = arith.select %11, %c1_i32, %c16_i32 : i32
    %13 = vector.broadcast %12 : i32 to vector<16x1xi32>
    %14 = arith.remsi %10, %13 : vector<16x1xi32>
    %c0_i32_10 = arith.constant 0 : i32
    %15 = vector.broadcast %c0_i32_10 : i32 to vector<16x1xi32>
    %16 = arith.cmpi ne, %14, %15 : vector<16x1xi32>
    %c0_i32_11 = arith.constant 0 : i32
    %17 = vector.broadcast %c0_i32_11 : i32 to vector<16x1xi32>
    %18 = arith.cmpi slt, %14, %17 : vector<16x1xi32>
    %c0_i32_12 = arith.constant 0 : i32
    %19 = arith.cmpi slt, %12, %c0_i32_12 : i32
    %20 = vector.broadcast %19 : i1 to vector<16x1xi1>
    %21 = vector.broadcast %20 : vector<16x1xi1> to vector<16x1xi1>
    %22 = arith.xori %18, %21 : vector<16x1xi1>
    %23 = arith.andi %22, %16 : vector<16x1xi1>
    %24 = vector.broadcast %12 : i32 to vector<16x1xi32>
    %25 = arith.addi %14, %24 : vector<16x1xi32>
    %26 = arith.select %23, %25, %14 : vector<16x1xi1>, vector<16x1xi32>
    %c0_i32_13 = arith.constant 0 : i32
    %27 = vector.broadcast %c0_i32_13 : i32 to vector<16x1xi32>
    %28 = arith.cmpi ne, %26, %27 : vector<16x1xi32>
    %29 = arith.extui %28 : vector<16x1xi1> to vector<16x1xi32>
    %30 = arith.sitofp %29 : vector<16x1xi32> to vector<16x1xf32>
    %c15_i32 = arith.constant 15 : i32
    %31 = vector.broadcast %c15_i32 : i32 to vector<16x1xi32>
    %32 = arith.cmpi ne, %26, %31 : vector<16x1xi32>
    %33 = arith.extui %32 : vector<16x1xi1> to vector<16x1xi32>
    %34 = arith.sitofp %33 : vector<16x1xi32> to vector<16x1xf32>
    %c1_i32_14 = arith.constant 1 : i32
    %35 = tpu.dynamic_rotate %3 by %c1_i32_14 dim 0 : vector<16x256xf32>, i32 -> vector<16x256xf32>
    %36 = vector.broadcast %30 : vector<16x1xf32> to vector<16x256xf32>
    %37 = arith.mulf %35, %36 : vector<16x256xf32>
    %38 = arith.addf %6, %37 : vector<16x256xf32>
    %c15_i32_15 = arith.constant 15 : i32
    %39 = tpu.dynamic_rotate %9 by %c15_i32_15 dim 0 : vector<16x256xf32>, i32 -> vector<16x256xf32>
    %40 = vector.broadcast %34 : vector<16x1xf32> to vector<16x256xf32>
    %41 = arith.mulf %39, %40 : vector<16x256xf32>
    %42 = arith.addf %38, %41 : vector<16x256xf32>
    %c0_16 = arith.constant 0 : index
    %c0_17 = arith.constant 0 : index
    %43 = vector.load %arg3[%c0_16, %c0_17] : memref<1x256xf32, #tpu.memory_space<vmem>>, vector<1x256xf32>
    %44 = vector.broadcast %43 : vector<1x256xf32> to vector<16x256xf32>
    %45 = arith.addf %42, %44 : vector<16x256xf32>
    %46 = vector.extract_strided_slice %45 {offsets = [0, 0], sizes = [16, 128], strides = [1, 1]} : vector<16x256xf32> to vector<16x128xf32>
    %cst_18 = arith.constant 0.000000e+00 : f32
    %47 = vector.broadcast %cst_18 : f32 to vector<16x128xf32>
    %48 = arith.maximumf %46, %47 : vector<16x128xf32>
    %49 = vector.extract_strided_slice %45 {offsets = [0, 128], sizes = [16, 128], strides = [1, 1]} : vector<16x256xf32> to vector<16x128xf32>
    %cst_19 = arith.constant 0.000000e+00 : f32
    %50 = vector.broadcast %cst_19 : f32 to vector<16x128xf32>
    %51 = arith.maximumf %49, %50 : vector<16x128xf32>
    %52 = arith.addf %48, %51 : vector<16x128xf32>
    %c0_20 = arith.constant 0 : index
    %c0_21 = arith.constant 0 : index
    %53 = vector.load %arg4[%c0_20, %c0_21] : memref<16x128xf32, #tpu.memory_space<vmem>>, vector<16x128xf32>
    tpu.vector_store %arg4[%c0_20, %c0_21], %52 {strides = array<i32>} : memref<16x128xf32, #tpu.memory_space<vmem>>, vector<16x128xf32>,
    return
  }
  func.func @transform_0(%arg0: i32) -> (i32, i32) {
    %c0_i32 = arith.constant 0 : i32
    %c0_i32_0 = arith.constant 0 : i32
    return %arg0, %c0_i32 : i32, i32
  }
  func.func @transform_1(%arg0: i32) -> (i32, i32, i32) {
    %c0_i32 = arith.constant 0 : i32
    %c0_i32_0 = arith.constant 0 : i32
    %c0_i32_1 = arith.constant 0 : i32
    %c0_i32_2 = arith.constant 0 : i32
    return %c0_i32, %c0_i32_0, %c0_i32_1 : i32, i32, i32
  }
  func.func @transform_2(%arg0: i32) -> (i32, i32) {
    %c0_i32 = arith.constant 0 : i32
    %c0_i32_0 = arith.constant 0 : i32
    %c0_i32_1 = arith.constant 0 : i32
    return %c0_i32, %c0_i32_0 : i32, i32
  }
  func.func @transform_3(%arg0: i32) -> (i32, i32) {
    %c0_i32 = arith.constant 0 : i32
    %c0_i32_0 = arith.constant 0 : i32
    return %arg0, %c0_i32 : i32, i32
  }
}

</mosaic_0001>

<bundles_post_ra>
// kernel: tpu_custom_call.1
= control target key start
LH: loop header
LB: loop body
LE: loop exit
PB: predicated region body
PF: predicated region fallthrough
CT: control target
= control target key end

     0   :  { %8 = vsyncpa [#allocation3], 0  ;;  %s1226_s0 = inlined_call_operand.hbm [shape: f32[32,64], index: 0, kind: input, shape index: {}]   ;;  %s1227_s1 = inlined_call_operand.hbm [shape: f32[3,64,256], index: 1, kind: input, shape index: {}]   ;;  %s1228_s2 = inlined_call_operand.vmem [shape: f32[1,256], index: 2, kind: input, shape index: {}]   ;;  %s1229_s3 = inlined_call_operand.hbm [shape: f32[32,128], index: 3, kind: output, shape index: {}]  }
   0x1   :  { %10 = vsyncpa [#allocation3 + $0x1], 0 }
   0x2   :  { %11 = vsyncpa [#allocation6], 0 }
   0x3   :  { %12 = vsyncpa [#allocation4], 0 }
   0x4   :  { %14 = vsyncpa [#allocation4 + $0x1], 0  ;;  %s992_s12 = smov 0   ;;  %s994_s13 = smov 0  }
   0x5   :  { %s996_s14 = smov 0   ;;  %s998_s15 = smov 0  }
   0x6 LB: > { %s1013_s16 = sadd.s32 4294967295, %s960_s15   ;;  %s686_s17 = sadd.s32 4294967294, %s960_s15   ;;  %s960_s15 = sphi %s998_s15, %s1249_s15   ;;  %s956_s14 = sphi %s996_s14, %s1248_s14   ;;  %s952_s13 = sphi %s994_s13, %s1247_s13   ;;  %s948_s12 = sphi %s992_s12, %s1246_s12  }
   0x7   : > { %p40_p0 = scmp.ne.s32.totalorder %s952_s13, %s948_s12  ;;  %p1230_p1 = scmp.eq.s32.totalorder %s1013_s16, 0 }
   0x8   : > { %p112_p3 = scmp.eq.s32.totalorder %s686_s17, 1  ;;  %p687_p5 = scmp.ge.s32.totalorder %s960_s15, 1 }
   0x9   : > { %p1022_p4 = por %p1230_p1, %p40_p0  ;;  %p119_p7 = scmp.lt.s32.totalorder %s960_s15, 3 }
   0xa   : > { %p1027_p6 = por %p112_p3, %p40_p0  ;;  %s962_s21 = smov [#allocation5]  }
   0xb   : > { %s1233_s18 = scalar_select %p1022_p4, 1, 0 }
   0xc   : > { %s1234_s19 = scalar_select %p1027_p6, 1, 0 }
   0xd   : > { %p1032_p8 = pnand %p687_p5, %p119_p7  ;;  %s131_s22 = sshll.u32 %s962_s21, 4  ;;  %s1036_s22 = int_to_ptr.vmem [resolvable:$true] %s131_s22 }
   0xe   : > { %s1048_s24 = sadd.s32 1, %s960_s15   ;;  %s27_s25 = sadd.s32 1, %s956_s14 }
   0xf   : > { %s1235_s20 = scalar_select %p1032_p8, 1, 0 }
  0x10   : > { %p776_p9 = pneg %p1032_p8  ;;  %s24_s26 = ssub.s32 %s960_s15, %s1048_s24 }
  0x11   : > { %s832_s29 = scalar_lea.hbm %s1227_s1, 6144 }
  0x12   : > { %p1043_p11 = pnand %p776_p9, %p1230_p1  ;;  %p833_p12 = scmp.ne.s32.totalorder %s1227_s1, %s832_s29 }
  0x13   : > { %p839_p5 = scmp.lt.u32.totalorder %s832_s29, %s1227_s1 }
  0x14   : > { %p834_p13 = pneg %p1043_p11 }
  0x16   : > { %p835_p0 = pnand %p834_p13, %p833_p12 }
  0x18   : > { %p836_p3 = pneg %p835_p0 }
  0x1a   : > { %p841_p7 = pnand %p839_p5, %p836_p3 }
  0x1c   : > { %844 = shalt.err (!%p841_p7)
}
  0x1d   : > { %s845_s7 = scalar_lea.vmem %s1036_s22, 6144  ;;  %p853_p2 = scmp.lt.s32.totalorder %s1036_s22, %s1036_s22 }
  0x1e   : > { %p846_p9 = scmp.ne.s32.totalorder %s1036_s22, %s845_s7  ;;  %p854_p6 = scmp.lt.s32.totalorder %s845_s7, %s845_s7 }
  0x20   : > { %p848_p10 = pnand %p846_p9, %p834_p13  ;;  %p855_p4 = por %p854_p6, %p853_p2 }
  0x22   : > { %p849_p1 = pneg %p848_p10 }
  0x24   : > { %p856_p8 = pnand %p855_p4, %p849_p1 }
  0x26   : > { %859 = shalt.err (!%p856_p8)
}
  0x27   : > { %s963_s8 = smov 256   ;;  %s964_s9 = smov 16  }
  0x28   : > { %779 = dma.hbm_to_vmem [thread:$0]  (!%p1043_p11), %s1227_s1, 6144, %s1036_s22, [#allocation6], %s963_s8, %s963_s8, %s964_s9  }
  0x29   : > { %p25_p2 = scmp.eq.s32.totalorder %s24_s26, 0  ;;  %p34_p1 = scmp.ne.s32.totalorder %s956_s14, %s952_s13 }
  0x2a   : > { %p35_p4 = scmp.eq.s32.totalorder %s960_s15, 0  ;;  %p789_p6 = scmp.lt.s32.totalorder %s960_s15, 2 }
  0x2b   : > { %s1079_s17 = scalar_select %p25_p2, %s956_s14, %s27_s25  }
  0x2c   : > { %p36_p8 = por %p35_p4, %p34_p1  ;;  %p1237_p10 = scmp.eq.s32.totalorder %s1013_s16, 1 }
  0x2d   : > { %s148_s27 = sand.u32 1, %s956_s14   ;;  %s710_s28 = sshll.u32 %s960_s15, 8 }
  0x2e   : > { %p1083_p12 = por %p1237_p10, %p34_p1  ;;  %s690_s29 = sshll.u32 %s148_s27, 4 }
  0x2f   : > { %s1092_s4 = scalar_lea.hbm %s1226_s0, %s710_s28  ;;  %s152_s22 = scalar_lea.vmem [#allocation2], %s690_s29 }
  0x30   : > { %s159_s25 = sshll.u32 %s152_s22, 4  ;;  %p1094_p11 = pnand %p789_p6, %p36_p8  ;;  %s1098_s25 = int_to_ptr.vmem [resolvable:$true] %s159_s25 }
  0x31   : > { %s1100_s5 = scalar_lea.sflag [#allocation3], %s148_s27  ;;  %s860_s6 = scalar_lea.hbm %s1092_s4, 256 }
  0x32   : > { %p861_p13 = scmp.ne.s32.totalorder %s1092_s4, %s860_s6  ;;  %p862_p0 = pneg %p1094_p11 }
  0x33   : > { %s865_s9 = scalar_lea.hbm %s1226_s0, 512  ;;  %p866_p7 = scmp.lt.u32.totalorder %s1092_s4, %s1226_s0 }
  0x34   : > { %p863_p3 = pnand %p862_p0, %p861_p13  ;;  %p867_p9 = scmp.lt.u32.totalorder %s865_s9, %s860_s6 }
  0x35   : > { %p869_p1 = scmp.lt.u32.totalorder %s860_s6, %s1092_s4 }
  0x36   : > { %p864_p5 = pneg %p863_p3  ;;  %p868_p2 = por %p867_p9, %p866_p7 }
  0x38   : > { %p870_p4 = por %p869_p1, %p868_p2 }
  0x3a   : > { %p871_p6 = pnand %p870_p4, %p864_p5 }
  0x3c   : > { %874 = shalt.err (!%p871_p6)
}
  0x3d   : > { %s875_s27 = scalar_lea.vmem %s1098_s25, 256  ;;  %s965_s28 = smov [#allocation2]  }
  0x3e   : > { %p876_p8 = scmp.ne.s32.totalorder %s1098_s25, %s875_s27  ;;  %s880_s29 = sshll.u32 %s965_s28, 4  ;;  %s881_s29 = int_to_ptr.vmem [resolvable:$false] %s880_s29 }
  0x3f   : > { %s882_s23 = scalar_lea.vmem %s881_s29, 512  ;;  %p883_p3 = scmp.lt.s32.totalorder %s1098_s25, %s881_s29 }
  0x40   : > { %p878_p10 = pnand %p876_p8, %p862_p0  ;;  %p884_p7 = scmp.lt.s32.totalorder %s882_s23, %s875_s27 }
  0x42   : > { %p879_p13 = pneg %p878_p10  ;;  %p885_p9 = por %p884_p7, %p883_p3 }
  0x44   : > { %p886_p2 = pnand %p885_p9, %p879_p13 }
  0x46   : > { %889 = shalt.err (!%p886_p2)
}
  0x47   : > { %s966_s30 = smov 128   ;;  %s967_s22 = smov 8  }
  0x48   : > { %783 = dma.hbm_to_vmem [thread:$0]  (!%p1094_p11), %s1092_s4, 256, %s1098_s25, %s1100_s5, %s966_s30, %s966_s30, %s967_s22  }
  0x49   : > { %p1240_p0 = scmp.ne.s32.totalorder %s1235_s20, 0 }
  0x4a   : > { %s1131_s6 = sand.u32 (!%p1240_p0), 1, %s952_s13   ;;  %p1241_p5 = scmp.ne.s32.totalorder (!%p1240_p0), %s1233_s18, 0 }
  0x4b   : > { %171 = sbr.rel (%p1240_p0) target bundleno = 361 (0x169), region = 32  ;;  %s694_s7 = sshll.u32 (!%p1240_p0), %s1131_s6, 4 }
  0x4c   : > { %s174_s8 = scalar_lea.sflag (!%p1240_p0), [#allocation3], %s1131_s6  ;;  %s1137_s9 = scalar_lea.vmem (!%p1240_p0), [#allocation2], %s694_s7 }
  0x52   : > { %935 = dma.done.wait (%p1241_p5), %s174_s8, 256  }
  0x53   : > { %937 = vsyncadd (%p1241_p5), %s174_s8, 4294967040  ;;  %p1242_p11 = scmp.eq.s32.totalorder %s1013_s16, 0 }
  0x55   : > { %939 = dma.done.wait (%p1242_p11), [#allocation6], 6144   ;;  %p1243_p1 = pmov %p1242_p11 }
  0x56   : > { %v968_v0 = vmov 0.0   ;;  %v209_v1 = vld [vmem:[#allocation5 + $0x8] sm:$0xff]  ;;  %v211_v2 = vld [vmem:[#allocation5 + $0x18] sm:$0xff]  ;;  %v208_v6 = vld [vmem:[#allocation5] sm:$0xff]  ;;  %vm224_vm0 = vcmask 523264   ;;  %s711_s4 = sshll.u32 %s1013_s16, 8 }
  0x57   : > { %941 = vsyncadd (%p1243_p1), [#allocation6], 4294961152  ;;  %295 = vmatprep.mubr.f32.mxu0 %v968_v0  ;;  %406 = vmatprep.mubr.f32.mxu1 %v968_v0  ;;  %v327_v3 = vld [vmem:[#allocation5 + $0x108] sm:$0xff]  ;;  %v712_v4 = vpack.c.bf16 %v211_v2, %v209_v1  ;;  %v329_v5 = vld [vmem:[#allocation5 + $0x118] sm:$0xff]  ;;  %s203_s25 = scalar_lea.vmem [#allocation7], %s694_s7  ;;  %s1180_s11 = scalar_lea.hbm %s1229_s3, %s711_s4 }
  0x58   : > { %v210_v7 = vld [vmem:[#allocation5 + $0x10] sm:$0xff]  ;;  %v728_v8 = vpack.c.bf16 %v329_v5, %v327_v3  ;;  %v326_v10 = vld [vmem:[#allocation5 + $0x100] sm:$0xff]  ;;  %v213_v12 = vld [vmem:[#allocation5 + $0x28] sm:$0xff]  ;;  %s603_s26 = sshll.u32 %s203_s25, 4  ;;  %s590_s16 = scalar_lea.sflag [#allocation4], %s1131_s6  ;;  %s1182_s26 = int_to_ptr.vmem [resolvable:$true] %s603_s26 }
  0x59   : > { %v714_v9 = vpack.c.bf16 %v210_v7, %v208_v6  ;;  %v328_v11 = vld [vmem:[#allocation5 + $0x110] sm:$0xff]  ;;  %713 = vmatprep.subr.bf16.mxu0 %v712_v4  ;;  %v215_v14 = vld [vmem:[#allocation5 + $0x38] sm:$0xff]  ;;  %v331_v15 = vld [vmem:[#allocation5 + $0x128] sm:$0xff]  ;;  %s890_s27 = scalar_lea.vmem %s1182_s26, 256  ;;  %s969_s28 = smov [#allocation7]  }
  0x5a   : > { %v730_v13 = vpack.c.bf16 %v328_v11, %v326_v10  ;;  %v333_v16 = vld [vmem:[#allocation5 + $0x138] sm:$0xff]  ;;  %729 = vmatprep.subr.bf16.mxu1 %v728_v8  ;;  %v716_v17 = vpack.c.bf16 %v215_v14, %v213_v12  ;;  %v212_v19 = vld [vmem:[#allocation5 + $0x20] sm:$0xff]  ;;  %v214_v20 = vld [vmem:[#allocation5 + $0x30] sm:$0xff]  ;;  %v419_v12 = vlaneseq  ;;  %p891_p4 = scmp.ne.s32.totalorder %s1182_s26, %s890_s27  ;;  %s894_s29 = sshll.u32 %s969_s28, 4  ;;  %s895_s29 = int_to_ptr.vmem [resolvable:$false] %s894_s29 }
  0x5b   : > { %715 = vmatpush1.bf16.msra.mxu0 %v714_v9  ;;  %v732_v18 = vpack.c.bf16 %v333_v16, %v331_v15  ;;  %v330_v21 = vld [vmem:[#allocation5 + $0x120] sm:$0xff]  ;;  %v718_v22 = vpack.c.bf16 %v214_v20, %v212_v19  ;;  %v332_v23 = vld [vmem:[#allocation5 + $0x130] sm:$0xff]  ;;  %v217_v24 = vld [vmem:[#allocation5 + $0x48] sm:$0xff]  ;;  %s896_s23 = scalar_lea.vmem %s895_s29, 512  ;;  %p897_p10 = scmp.lt.s32.totalorder %s1182_s26, %s895_s29 }
  0x5c   : > { %731 = vmatpush1.bf16.msra.mxu1 %v730_v13  ;;  %v219_v25 = vld [vmem:[#allocation5 + $0x58] sm:$0xff]  ;;  %717 = vmatprep.subr.bf16.mxu0 %v716_v17  ;;  %v734_v26 = vpack.c.bf16 %v332_v23, %v330_v21  ;;  %v335_v28 = vld [vmem:[#allocation5 + $0x148] sm:$0xff]  ;;  %v216_v30 = vld [vmem:[#allocation5 + $0x40] sm:$0xff]  ;;  %v420_v14 = vshrl.u32 %v419_v12, 7  ;;  %p892_p6 = pnand %p891_p4, %p1083_p12  ;;  %p898_p13 = scmp.lt.s32.totalorder %s896_s23, %s890_s27 }
  0x5d   : > { %733 = vmatprep.subr.bf16.mxu1 %v732_v18  ;;  %v720_v27 = vpack.c.bf16 %v219_v25, %v217_v24  ;;  %v337_v29 = vld [vmem:[#allocation5 + $0x158] sm:$0xff]  ;;  %v218_v32 = vld [vmem:[#allocation5 + $0x50] sm:$0xff]  ;;  %v334_v33 = vld [vmem:[#allocation5 + $0x140] sm:$0xff] }
  0x5e   : > { %v736_v31 = vpack.c.bf16 %v337_v29, %v335_v28  ;;  %v336_v34 = vld [vmem:[#allocation5 + $0x150] sm:$0xff]  ;;  %v722_v35 = vpack.c.bf16 %v218_v32, %v216_v30  ;;  %v221_v36 = vld [vmem:[#allocation5 + $0x68] sm:$0xff]  ;;  %v223_v37 = vld [vmem:[#allocation5 + $0x78] sm:$0xff]  ;;  %vm462_vm1 = vcmp.lt.s32.totalorder %v420_v14, 1  ;;  %v421_v19 = vadd.s32 8, %v420_v14  ;;  %p893_p8 = pneg %p892_p6  ;;  %p899_p3 = por %p898_p13, %p897_p10 }
  0x5f   : > { %719 = vmatpush1.bf16.msra.mxu0 %v718_v22  ;;  %v339_v38 = vld [vmem:[#allocation5 + $0x168] sm:$0xff]  ;;  %v738_v39 = vpack.c.bf16 %v336_v34, %v334_v33  ;;  %v724_v40 = vpack.c.bf16 %v223_v37, %v221_v36  ;;  %v341_v41 = vld [vmem:[#allocation5 + $0x178] sm:$0xff]  ;;  %v220_v42 = vld [vmem:[#allocation5 + $0x60] sm:$0xff]  ;;  %vm552_vm2 = vcmp.lt.s32.totalorder %v420_v14, 7  ;;  %v426_v24 = vand.u32 15, %v420_v14 }
  0x60   : > { %735 = vmatpush1.bf16.msra.mxu1 %v734_v26  ;;  %721 = vmatprep.subr.bf16.mxu0 %v720_v27  ;;  %v222_v43 = vld [vmem:[#allocation5 + $0x70] sm:$0xff]  ;;  %v740_v44 = vpack.c.bf16 %v341_v41, %v339_v38  ;;  %v338_v45 = vld [vmem:[#allocation5 + $0x160] sm:$0xff]  ;;  %v310_v47 = vld [vmem:[#allocation5 + $0x88] sm:$0xff]  ;;  %v433_v36 = vand.u32 15, %v421_v19  ;;  %p900_p7 = pnand %p899_p3, %p893_p8 }
  0x61   : > { %737 = vmatprep.subr.bf16.mxu1 %v736_v31  ;;  %v340_v46 = vld [vmem:[#allocation5 + $0x170] sm:$0xff]  ;;  %v312_v48 = vld [vmem:[#allocation5 + $0x98] sm:$0xff]  ;;  %v726_v49 = vpack.c.bf16 %v222_v43, %v220_v42  ;;  %v309_v52 = vld [vmem:[#allocation5 + $0x80] sm:$0xff]  ;;  %vm446_vm3 = vcmp.ne.s32.totalorder %v426_v24, 0  ;;  %v569_v42 = vsub.s32 0, %v420_v14 }
  0x62   : > { %v742_v50 = vpack.c.bf16 %v340_v46, %v338_v45  ;;  %v744_v51 = vpack.c.bf16 %v312_v48, %v310_v47  ;;  %v311_v53 = vld [vmem:[#allocation5 + $0x90] sm:$0xff]  ;;  %v314_v54 = vld [vmem:[#allocation5 + $0xa8] sm:$0xff]  ;;  %v316_v55 = vld [vmem:[#allocation5 + $0xb8] sm:$0xff]  ;;  %v701_v41 = vsel %vm446_vm3, 1.0, %v968_v0  ;;  %vm453_vm4 = vcmp.ne.s32.totalorder %v433_v36, 15 }
  0x63   : > { %723 = vmatpush1.bf16.msra.mxu0 %v722_v35  ;;  %v206_v56 = vld [vmem:[%s1137_s9] sm:$0xff]  ;;  %v746_v57 = vpack.c.bf16 %v311_v53, %v309_v52  ;;  %v748_v60 = vpack.c.bf16 %v316_v55, %v314_v54  ;;  %v318_v61 = vld [vmem:[#allocation5 + $0xc8] sm:$0xff]  ;;  %v320_v62 = vld [vmem:[#allocation5 + $0xd8] sm:$0xff]  ;;  %v702_v46 = vsel %vm453_vm4, 1.0, %v968_v0 }
  0x64   : > { %739 = vmatpush1.bf16.msra.mxu1 %v738_v39  ;;  %725 = vmatprep.subr.bf16.mxu0 %v724_v40  ;;  %v313_v58 = vld [vmem:[#allocation5 + $0xa0] sm:$0xff]  ;;  %v315_v59 = vld [vmem:[#allocation5 + $0xb0] sm:$0xff]  ;;  %v207_v63 = vld [vmem:[%s1137_s9 + $0x8] sm:$0xff]  ;;  %v752_v2 = vpack.c.bf16 %v320_v62, %v318_v61 }
  0x65   : > { %741 = vmatprep.subr.bf16.mxu1 %v740_v44  ;;  %v750_v1 = vpack.c.bf16 %v315_v59, %v313_v58  ;;  %v317_v3 = vld [vmem:[#allocation5 + $0xc0] sm:$0xff]  ;;  %v319_v4 = vld [vmem:[#allocation5 + $0xd0] sm:$0xff]  ;;  %v322_v5 = vld [vmem:[#allocation5 + $0xe8] sm:$0xff]  ;;  %v573_v44 = vsub.s32 1, %v420_v14 }
  0x66   : > { %v324_v6 = vld [vmem:[#allocation5 + $0xf8] sm:$0xff]  ;;  %v754_v7 = vpack.c.bf16 %v319_v4, %v317_v3  ;;  %v321_v9 = vld [vmem:[#allocation5 + $0xe0] sm:$0xff]  ;;  %v323_v10 = vld [vmem:[#allocation5 + $0xf0] sm:$0xff] }
  0x67   : > { %727 = vmatpush1.bf16.msra.mxu0 %v726_v49  ;;  %v756_v8 = vpack.c.bf16 %v324_v6, %v322_v5  ;;  %v758_v11 = vpack.c.bf16 %v323_v10, %v321_v9  ;;  %v565_v43 = vld [vmem:[%s1228_s2] sm:$0x3] }
  0x68   : > { %743 = vmatpush1.bf16.msra.mxu1 %v742_v50  ;;  %745 = vmatprep.subr.bf16.mxu0 %v744_v51  ;;  %v570_v50 = vrot.slane %v565_v43, %v569_v42 }
  0x69   : > { %760 = vmatprep.subr.bf16.mxu1 %v744_v51 }
  0x6a   : > { %697 = vmatmul.mubr.msk.f32.vlgmr.msra.gmra.mrb[0].mxu0 %vm224_vm0, %v206_v56 }
  0x6b   : > { %699 = vmatmul.mubr.msk.f32.vlgmr.msra.gmra.mrb[0].mxu1 %vm224_vm0, %v206_v56  ;;  %747 = vmatpush1.bf16.msra.mxu0 %v746_v57 }
  0x6c   : > { %764 = vmatpush1.bf16.msra.mxu1 %v746_v57  ;;  %301 = vmatprep.mubr.f32.mxu0 %v968_v0 }
  0x6d   : > { %412 = vmatprep.mubr.f32.mxu1 %v968_v0  ;;  %749 = vmatprep.subr.bf16.mxu0 %v748_v60 }
  0x6e   : > { %698 = vmatmul.mubr.msk.f32.gmra.mrb[2].mxu0 %vm224_vm0, %v207_v63  ;;  %761 = vmatprep.subr.bf16.mxu1 %v748_v60 }
  0x6f   : > { %700 = vmatmul.mubr.msk.f32.gmra.mrb[2].mxu1 %vm224_vm0, %v207_v63  ;;  %751 = vmatpush1.bf16.msra.mxu0 %v750_v1 }
  0x70   : > { %765 = vmatpush1.bf16.msra.mxu1 %v750_v1  ;;  %753 = vmatprep.subr.bf16.mxu0 %v752_v2 }
  0x71   : > { %762 = vmatprep.subr.bf16.mxu1 %v752_v2  ;;  %535 = vmatprep.mubr.f32.mxu0 %v968_v0 }
  0x72   : > { %541 = vmatprep.mubr.f32.mxu1 %v968_v0 }
  0x73   : > { %755 = vmatpush1.bf16.msra.mxu0 %v754_v7 }
  0x74   : > { %766 = vmatpush1.bf16.msra.mxu1 %v754_v7  ;;  %757 = vmatprep.subr.bf16.mxu0 %v756_v8 }
  0x75   : > { %763 = vmatprep.subr.bf16.mxu1 %v756_v8 }
  0x77   : > { %759 = vmatpush1.bf16.msra.mxu0 %v758_v11 }
  0x78   : > { %767 = vmatpush1.bf16.msra.mxu1 %v758_v11 }
  0x7a   : > { %703 = vmatmul.mubr.msk.f32.vlgmr.msra.gmra.mrb[4].mxu0 %vm224_vm0, %v206_v56  ;;  %v574_v56 = vrot.slane %v565_v43, %v573_v44 }
  0x7b   : > { %704 = vmatmul.mubr.msk.f32.vlgmr.msra.gmra.mrb[4].mxu1 %vm224_vm0, %v207_v63 }
 0x13d   : > { %v297_v13 = vpop.f32.mrb[0].mxu0 }
 0x13e   : > { %v408_v15 = vpop.f32.mrb[0].mxu1  ;;  %v299_v16 = vpop.f32.mrb[1].mxu0  ;;  %v458_v20 = vrot.slane %v297_v13, 7 }
 0x13f   : > { %v410_v17 = vpop.f32.mrb[1].mxu1  ;;  %v548_v25 = vrot.slane %v408_v15, 1  ;;  %v459_v26 = vrot.slane %v299_v16, 7 }
 0x140   : > { %v549_v30 = vrot.slane %v410_v17, 1 }
 0x141   : > { %v303_v18 = vpop.f32.mrb[2].mxu0 }
 0x142   : > { %v460_v21 = vrot.slane %v303_v18, 7  ;;  %v414_v22 = vpop.f32.mrb[2].mxu1  ;;  %v305_v23 = vpop.f32.mrb[3].mxu0 }
 0x143   : > { %v550_v27 = vrot.slane %v414_v22, 1  ;;  %v461_v28 = vrot.slane %v305_v23, 7  ;;  %v416_v29 = vpop.f32.mrb[3].mxu1 }
 0x144   : > { %v551_v31 = vrot.slane %v416_v29, 1  ;;  %v465_v32 = vsel %vm462_vm1, %v460_v21, %v458_v20  ;;  %v463_v33 = vsel %vm462_vm1, %v458_v20, %v460_v21 }
 0x145   : > { %v555_v34 = vsel %vm552_vm2, %v550_v27, %v548_v25  ;;  %v553_v35 = vsel %vm552_vm2, %v548_v25, %v550_v27  ;;  %v466_v37 = vsel %vm462_vm1, %v461_v28, %v459_v26  ;;  %v464_v40 = vsel %vm462_vm1, %v459_v26, %v461_v28 }
 0x146   : > { %v556_v38 = vsel %vm552_vm2, %v551_v31, %v549_v30  ;;  %v554_v39 = vsel %vm552_vm2, %v549_v30, %v551_v31  ;;  %v467_v45 = vmul.f32 %v701_v41, %v465_v32  ;;  %v468_v48 = vmul.f32 %v701_v41, %v466_v37 }
 0x147   : > { %v559_v54 = vmul.f32 %v702_v46, %v555_v34  ;;  %v560_v60 = vmul.f32 %v702_v46, %v556_v38 }
 0x14d   : > { %v537_v47 = vpop.f32.mrb[4].mxu0 }
 0x14e   : > { %v538_v49 = vadd.f32 %v537_v47, %v467_v45  ;;  %v543_v51 = vpop.f32.mrb[4].mxu1  ;;  %v539_v52 = vpop.f32.mrb[5].mxu0 }
 0x14f   : > { %v544_v53 = vadd.f32 %v543_v51, %v463_v33  ;;  %v540_v55 = vadd.f32 %v539_v52, %v468_v48  ;;  %v545_v57 = vpop.f32.mrb[5].mxu1 }
 0x150   : > { %v561_v58 = vadd.f32 %v553_v35, %v538_v49  ;;  %v546_v59 = vadd.f32 %v545_v57, %v464_v40 }
 0x151   : > { %v563_v61 = vadd.f32 %v559_v54, %v544_v53  ;;  %v562_v62 = vadd.f32 %v554_v39, %v540_v55 }
 0x152   : > { %v577_v63 = vadd.f32 %v570_v50, %v561_v58  ;;  %v564_v0 = vadd.f32 %v560_v60, %v546_v59 }
 0x153   : > { %v579_v1 = vadd.f32 %v570_v50, %v563_v61  ;;  %v578_v2 = vadd.f32 %v574_v56, %v562_v62 }
 0x154   : > { %v581_v3 = vmax.f32 %v577_v63, 0.0  ;;  %v580_v4 = vadd.f32 %v574_v56, %v564_v0 }
 0x155   : > { %v582_v5 = vmax.f32 %v579_v1, 0.0  ;;  %v583_v6 = vmax.f32 %v578_v2, 0.0 }
 0x156   : > { %v584_v7 = vmax.f32 %v580_v4, 0.0 }
 0x157   : > { %v585_v8 = vadd.f32 %v583_v6, %v581_v3 }
 0x158   : > { %v586_v9 = vadd.f32 %v584_v7, %v582_v5 }
 0x159   : > { %587 = vst [vmem:[%s203_s25] sm:$0xff] %v585_v8 }
 0x15a   : > { %588 = vst [vmem:[%s203_s25 + $0x8] sm:$0xff] %v586_v9 }
 0x15b   : > { %903 = shalt.err (!%p900_p7)
}
 0x15c   : > { %s904_s30 = scalar_lea.hbm %s1180_s11, 256  ;;  %s908_s8 = scalar_lea.hbm %s1229_s3, 512 }
 0x15d   : > { %p905_p9 = scmp.ne.s32.totalorder %s1180_s11, %s904_s30  ;;  %p909_p5 = scmp.lt.u32.totalorder %s1180_s11, %s1229_s3 }
 0x15e   : > { %p910_p11 = scmp.lt.u32.totalorder %s908_s8, %s904_s30  ;;  %p912_p4 = scmp.lt.u32.totalorder %s904_s30, %s1180_s11 }
 0x15f   : > { %p906_p2 = pnand %p905_p9, %p1083_p12 }
 0x160   : > { %p911_p1 = por %p910_p11, %p909_p5 }
 0x161   : > { %p907_p0 = pneg %p906_p2 }
 0x162   : > { %p913_p6 = por %p912_p4, %p911_p1 }
 0x164   : > { %p914_p8 = pnand %p913_p6, %p907_p0 }
 0x166   : > { %917 = shalt.err (!%p914_p8)
}
 0x167   : > { %s970_s20 = smov 128   ;;  %s971_s4 = smov 8  }
 0x168   : > { %774 = dma.vmem_to_hbm [thread:$0]  (%p1083_p12), %s1182_s26, 256, %s1180_s11, %s590_s16, %s970_s20, %s970_s20, %s971_s4  }
 0x169 PF: > { %s618_s25 = sand.u32 1, %s948_s12   ;;  %p1244_p10 = scmp.ne.s32.totalorder %s1234_s19, 0 }
 0x16a   : > { %p1245_p13 = scmp.ge.s32.totalorder %s960_s15, 2  ;;  %s619_s5 = scalar_lea.sflag [#allocation4], %s618_s25 }
 0x16c   : > { %p785_p3 = pnand %p1245_p13, %p1244_p10 }
 0x16e   : > { %943 = dma.done.wait (!%p785_p3), %s619_s5, 256  }
 0x16f   : > { %945 = vsyncadd (!%p785_p3), %s619_s5, 4294967040  ;;  %p17_p7 = scmp.ge.s32.totalorder %s1048_s24, 4   ;;  %s1246_s12 = smov %s952_s13 }
 0x170   : > { %s1247_s13 = smov %s956_s14  ;;  %s1248_s14 = smov %s1079_s17 }
 0x171   : > { %s1249_s15 = smov %s1048_s24  ;;  %19 = sbr.rel (!%p17_p7) target bundleno = 6 (0x6), region = 83 }
 0x178   :  { %624 = vsyncpa [#allocation3], 1 }
 0x179   :  { %626 = vsyncpa [#allocation3 + $0x1], 1 }
 0x17a   :  { %627 = vsyncpa [#allocation6], 1 }
 0x17b   :  { %628 = vsyncpa [#allocation4], 1 }
 0x17c   :  { %630 = vsyncpa [#allocation4 + $0x1], 1 }

</bundles_post_ra>
